<compile_context>
chip_gen: v7x
topology: tpu7x:2x2x1
jax: 0.10.0
libtpu: 0.0.40
codegen_flags: <defaults>
</compile_context>

<pallas_src>
import jax
import jax.numpy as jnp
from jax.experimental import pallas as pl
from jax.experimental.pallas import tpu as pltpu

BN_EPS = 1e-5
NUM_CLASSES = 20  # TODO(synk): fc8/avgpool/dropout are not defined in the given __init__;
#                 using WideResNet-38 / PSA conventions: fc8 = Conv2d(4096, 20, 1, bias=False),
#                 avgpool = global average pool, dropout = identity (inference).

# 48 MiB scoped VMEM: plenty for the bf16 tiles below, still safe on v7x's 64 MiB physical.
VMEM_LIMIT = 48 * 1024 * 1024


def _round_up(x, m):
    return ((x + m - 1) // m) * m


def _pick_tile(dim, candidates):
    for c in candidates:
        if dim % c == 0:
            return c
    return candidates[-1]


# ----------------------------- Pallas matmul kernels -----------------------------
# bf16 operands, f32 accumulation in a VMEM scratch, optional fused epilogue.

def _mm_kernel(a_ref, b_ref, o_ref, acc_ref):
    @pl.when(pl.program_id(2) == 0)
    def _():
        acc_ref[...] = jnp.zeros_like(acc_ref)

    acc_ref[...] += jnp.dot(a_ref[...], b_ref[...], preferred_element_type=jnp.float32)

    @pl.when(pl.program_id(2) == pl.num_programs(2) - 1)
    def _():
        o_ref[...] = acc_ref[...].astype(o_ref.dtype)


def _mm_bnrelu_kernel(a_ref, b_ref, s_ref, t_ref, o_ref, acc_ref):
    @pl.when(pl.program_id(2) == 0)
    def _():
        acc_ref[...] = jnp.zeros_like(acc_ref)

    acc_ref[...] += jnp.dot(a_ref[...], b_ref[...], preferred_element_type=jnp.float32)

    @pl.when(pl.program_id(2) == pl.num_programs(2) - 1)
    def _():
        y = jnp.maximum(acc_ref[...] * s_ref[...] + t_ref[...], 0.0)  # f32 epilogue
        o_ref[...] = y.astype(o_ref.dtype)


def _mm_add_kernel(a_ref, b_ref, r_ref, o_ref, acc_ref):
    @pl.when(pl.program_id(2) == 0)
    def _():
        acc_ref[...] = jnp.zeros_like(acc_ref)

    acc_ref[...] += jnp.dot(a_ref[...], b_ref[...], preferred_element_type=jnp.float32)

    @pl.when(pl.program_id(2) == pl.num_programs(2) - 1)
    def _():
        o_ref[...] = (acc_ref[...] + r_ref[...].astype(jnp.float32)).astype(o_ref.dtype)


def matmul_fused(a, b_padded, K, N, *, scale=None, bias=None, residual=None):
    """[M,K] @ pre-padded [Kp,Np] bf16 weight -> [M,N] bf16.
    Optional fused epilogue: BN+ReLU (per-channel scale/bias) OR residual add."""
    M = a.shape[0]
    Kp, Np = b_padded.shape

    # Tile selection: bf16 sublane packing -> M tiles multiple of 16; lanes multiple of 128.
    if M <= 256:
        Mp = max(_round_up(M, 16), 16)
        tm = Mp
    else:
        Mp = _round_up(M, 256)
        tm = 256
    tn = _pick_tile(Np, (256, 128))
    tk = _pick_tile(Kp, (512, 256, 128))

    a = a.astype(jnp.bfloat16)
    if Mp != M or Kp != K:
        a = jnp.pad(a, ((0, Mp - M), (0, Kp - K)))

    a_spec = pl.BlockSpec((tm, tk), lambda i, j, k: (i, k))
    b_spec = pl.BlockSpec((tk, tn), lambda i, j, k: (k, j))
    o_spec = pl.BlockSpec((tm, tn), lambda i, j, k: (i, j))

    if scale is not None:
        kernel = _mm_bnrelu_kernel
        s = scale.reshape(1, -1).astype(jnp.float32)
        t = bias.reshape(1, -1).astype(jnp.float32)
        if s.shape[1] != Np:
            s = jnp.pad(s, ((0, 0), (0, Np - s.shape[1])))
            t = jnp.pad(t, ((0, 0), (0, Np - t.shape[1])))
        extra_in = [s, t]
        extra_specs = [pl.BlockSpec((1, tn), lambda i, j, k: (0, j)),
                       pl.BlockSpec((1, tn), lambda i, j, k: (0, j))]
    elif residual is not None:
        kernel = _mm_add_kernel
        r = residual.astype(jnp.bfloat16)
        if r.shape[0] != Mp or r.shape[1] != Np:
            r = jnp.pad(r, ((0, Mp - r.shape[0]), (0, Np - r.shape[1])))
        extra_in = [r]
        extra_specs = [pl.BlockSpec((tm, tn), lambda i, j, k: (i, j))]
    else:
        kernel = _mm_kernel
        extra_in = []
        extra_specs = []

    cost = pl.CostEstimate(
        flops=2 * Mp * Np * Kp, transcendentals=0,
        bytes_accessed=2 * (Mp * Kp + Kp * Np + Mp * Np))

    out = pl.pallas_call(
        kernel,
        out_shape=jax.ShapeDtypeStruct((Mp, Np), jnp.bfloat16),
        grid_spec=pltpu.PrefetchScalarGridSpec(
            num_scalar_prefetch=0,
            grid=(Mp // tm, Np // tn, Kp // tk),
            in_specs=[a_spec, b_spec] + extra_specs,
            out_specs=o_spec,
            scratch_shapes=[pltpu.VMEM((tm, tn), jnp.float32)],
        ),
        compiler_params=pltpu.CompilerParams(
            dimension_semantics=("parallel", "parallel", "arbitrary"),
            vmem_limit_bytes=VMEM_LIMIT),
        cost_estimate=cost,
    )(a, b_padded, *extra_in)

    if Mp != M or Np != N:
        out = out[:M, :N]
    return out


# ----------------------- standalone BN+ReLU (tiled, row-parallel) -----------------------

def _bn_relu_kernel(x_ref, s_ref, t_ref, o_ref):
    y = jnp.maximum(x_ref[...].astype(jnp.float32) * s_ref[...] + t_ref[...], 0.0)
    o_ref[...] = y.astype(o_ref.dtype)


def bn_relu_pallas(x, scale, bias):
    """Pre-activation inference BN + ReLU on an NHWC tensor, tiled over rows."""
    shape = x.shape
    C = shape[-1]
    x2 = x.reshape(-1, C).astype(jnp.bfloat16)
    M = x2.shape[0]
    if M <= 256:
        Mp = max(_round_up(M, 16), 16)
        tr = Mp
    else:
        Mp = _round_up(M, 256)
        tr = 256  # (256, C) bf16 <= 2 MiB even at C=4096 -> safe on v7x's 64 MiB VMEM
    if Mp != M:
        x2 = jnp.pad(x2, ((0, Mp - M), (0, 0)))

    out = pl.pallas_call(
        _bn_relu_kernel,
        out_shape=jax.ShapeDtypeStruct((Mp, C), jnp.bfloat16),
        grid=(Mp // tr,),
        in_specs=[pl.BlockSpec((tr, C), lambda i: (i, 0)),
                  pl.BlockSpec((1, C), lambda i: (0, 0)),
                  pl.BlockSpec((1, C), lambda i: (0, 0))],
        out_specs=pl.BlockSpec((tr, C), lambda i: (i, 0)),
        compiler_params=pltpu.CompilerParams(
            dimension_semantics=("parallel",),
            vmem_limit_bytes=VMEM_LIMIT),
    )(x2, scale.reshape(1, C).astype(jnp.float32), bias.reshape(1, C).astype(jnp.float32))

    if Mp != M:
        out = out[:M]
    return out.reshape(shape)


# ------------------------------- conv wrapper -------------------------------

def conv2d_pallas(x, cw, stride=1, dilation=1, padding=0, *,
                  scale=None, bias=None, residual=None):
    """x: [N,H,W,Cin] bf16; cw: prepared weight dict. im2col (bf16 glue) + fused Pallas matmul."""
    N, H, W, Cin = x.shape
    kh, kw, cout = cw['kh'], cw['kw'], cw['cout']
    x = x.astype(jnp.bfloat16)
    Ho = (H + 2 * padding - dilation * (kh - 1) - 1) // stride + 1
    Wo = (W + 2 * padding - dilation * (kw - 1) - 1) // stride + 1

    if kh == 1 and kw == 1 and padding == 0:
        if stride != 1:
            x = x[:, ::stride, ::stride, :]
        patches = x.reshape(N * Ho * Wo, Cin)
    else:
        # TODO(synk): fold the KH*KW taps into the matmul reduction grid (offsetting index_map)
        #             to avoid materializing this bf16 im2col copy entirely.
        xp = jnp.pad(x, ((0, 0), (padding, padding), (padding, padding), (0, 0)))
        cols = []
        for i in range(kh):
            for j in range(kw):
                cols.append(
                    xp[:, i * dilation:i * dilation + (Ho - 1) * stride + 1:stride,
                          j * dilation:j * dilation + (Wo - 1) * stride + 1:stride, :])
        patches = jnp.concatenate(cols, axis=-1).reshape(N * Ho * Wo, kh * kw * Cin)

    res2d = None if residual is None else residual.reshape(N * Ho * Wo, cout)
    out = matmul_fused(patches, cw['w'], K=kh * kw * Cin, N=cout,
                       scale=scale, bias=bias, residual=res2d)
    return out.reshape(N, Ho, Wo, cout)


# ----------------------------- parameter init ------------------------------
# Weights are stored pre-reshaped [K, Cout], padded to multiples of 128, in bf16.
# BN params are pre-folded to (scale, bias) once at init (inference form).

def init_conv(key, kh, kw, cin, cout):
    fan_in = kh * kw * cin
    w = jax.random.normal(key, (kh, kw, cin, cout), jnp.float32) * jnp.sqrt(2.0 / fan_in)
    K = kh * kw * cin
    Kp, Np = _round_up(K, 128), _round_up(cout, 128)
    w2 = jnp.pad(w.reshape(K, cout), ((0, Kp - K), (0, Np - cout))).astype(jnp.bfloat16)
    return dict(w=w2, kh=kh, kw=kw, cin=cin, cout=cout)


def init_bn(c):
    gamma = jnp.ones((c,), jnp.float32)
    beta = jnp.zeros((c,), jnp.float32)
    mean = jnp.zeros((c,), jnp.float32)
    var = jnp.ones((c,), jnp.float32)
    scale = gamma / jnp.sqrt(var + BN_EPS)
    return dict(scale=scale, bias=beta - mean * scale)


def init_resblock(key, cin, cmid, cout, stride, first_dil, dil):
    k1, k2, k3 = jax.random.split(key, 3)
    same = (cin == cout and stride == 1)
    p = dict(bn2a=init_bn(cin),
             conv2a=init_conv(k1, 3, 3, cin, cmid),
             bn2b1=init_bn(cmid),
             conv2b1=init_conv(k2, 3, 3, cmid, cout),
             cfg=(stride, first_dil, dil, same))
    if not same:
        p['conv1'] = init_conv(k3, 1, 1, cin, cout)
    return p


def init_resbot(key, cin, cout, dil):
    k1, k2, k3, k4 = jax.random.split(key, 4)
    return dict(bn2a=init_bn(cin),
                conv2a=init_conv(k1, 1, 1, cin, cout // 4),
                bn2b1=init_bn(cout // 4),
                conv2b1=init_conv(k2, 3, 3, cout // 4, cout // 2),
                bn2b2=init_bn(cout // 2),
                conv2b2=init_conv(k3, 1, 1, cout // 2, cout),
                conv1=init_conv(k4, 1, 1, cin, cout),
                dil=dil)


def init_model(key):
    keys = jax.random.split(key, 24)
    P = {}
    P['conv1a'] = init_conv(keys[0], 3, 3, 3, 64)
    P['res2a'] = init_resblock(keys[1], 64, 128, 128, 2, 1, 1)
    P['res2b1'] = init_resblock(keys[2], 128, 128, 128, 1, 1, 1)
    P['res2b2'] = init_resblock(keys[3], 128, 128, 128, 1, 1, 1)
    P['res3a'] = init_resblock(keys[4], 128, 256, 256, 2, 1, 1)
    P['res3b1'] = init_resblock(keys[5], 256, 256, 256, 1, 1, 1)
    P['res3b2'] = init_resblock(keys[6], 256, 256, 256, 1, 1, 1)
    P['res4a'] = init_resblock(keys[7], 256, 512, 512, 2, 1, 1)
    P['res4b1'] = init_resblock(keys[8], 512, 512, 512, 1, 1, 1)
    P['res4b2'] = init_resblock(keys[9], 512, 512, 512, 1, 1, 1)
    P['res4b3'] = init_resblock(keys[10], 512, 512, 512, 1, 1, 1)
    P['res4b4'] = init_resblock(keys[11], 512, 512, 512, 1, 1, 1)
    P['res4b5'] = init_resblock(keys[12], 512, 512, 512, 1, 1, 1)
    P['res5a'] = init_resblock(keys[13], 512, 512, 1024, 1, 1, 2)
    P['res5b1'] = init_resblock(keys[14], 1024, 512, 1024, 1, 2, 2)
    P['res5b2'] = init_resblock(keys[15], 1024, 512, 1024, 1, 2, 2)
    P['res6a'] = init_resbot(keys[16], 1024, 2048, 4)
    P['res7a'] = init_resbot(keys[17], 2048, 4096, 4)
    P['bn7'] = init_bn(4096)
    # fc8 head (plain JAX, see forward): 4096 -> NUM_CLASSES, no bias.
    P['fc8'] = (jax.random.normal(keys[18], (4096, NUM_CLASSES), jnp.float32)
                * jnp.sqrt(2.0 / 4096))
    return P


# ----------------------------- forward passes ------------------------------

def resblock_fwd(p, x):
    stride, fd, dil, same = p['cfg']
    # TODO(synk): bn2a could additionally be fused into the previous block's add epilogue
    #             (needs a dual-output kernel since the raw sum is the next skip connection).
    br2 = bn_relu_pallas(x, p['bn2a']['scale'], p['bn2a']['bias'])   # pre-activation BN+ReLU
    x_bn_relu = br2
    if same:
        br1 = x
    else:
        br1 = conv2d_pallas(br2, p['conv1'], stride=stride)
    # conv2a with bn2b1+ReLU fused into the matmul epilogue
    br2 = conv2d_pallas(br2, p['conv2a'], stride=stride, dilation=fd, padding=fd,
                        scale=p['bn2b1']['scale'], bias=p['bn2b1']['bias'])
    # conv2b1 with the residual add fused into the matmul epilogue
    out = conv2d_pallas(br2, p['conv2b1'], stride=1, dilation=dil, padding=dil,
                        residual=br1)
    return out, x_bn_relu


def resbot_fwd(p, x):
    dil = p['dil']
    br2 = bn_relu_pallas(x, p['bn2a']['scale'], p['bn2a']['bias'])
    x_bn_relu = br2
    br1 = conv2d_pallas(br2, p['conv1'])
    br2 = conv2d_pallas(br2, p['conv2a'],
                        scale=p['bn2b1']['scale'], bias=p['bn2b1']['bias'])
    # dropout_2b1: identity at inference
    br2 = conv2d_pallas(br2, p['conv2b1'], dilation=dil, padding=dil,
                        scale=p['bn2b2']['scale'], bias=p['bn2b2']['bias'])
    # dropout_2b2: identity at inference
    out = conv2d_pallas(br2, p['conv2b2'], residual=br1)
    return out, x_bn_relu


def forward(P, x_nchw):
    """Mirrors ResNet38ClassificationModel.forward (inference). Input NCHW like PyTorch."""
    x = jnp.transpose(x_nchw.astype(jnp.float32), (0, 2, 3, 1)).astype(jnp.bfloat16)  # NHWC
    x = conv2d_pallas(x, P['conv1a'], padding=1)
    for name in ['res2a', 'res2b1', 'res2b2',
                 'res3a', 'res3b1', 'res3b2',
                 'res4a', 'res4b1', 'res4b2', 'res4b3', 'res4b4', 'res4b5',
                 'res5a', 'res5b1', 'res5b2']:
        x, _ = resblock_fwd(P[name], x)
    x, _ = resbot_fwd(P['res6a'], x)
    x, _ = resbot_fwd(P['res7a'], x)
    x = bn_relu_pallas(x, P['bn7']['scale'], P['bn7']['bias'])   # bn7 + relu7 (== 'x7a')
    # dropout: identity at inference
    N, H, W, C = x.shape
    z = jnp.mean(x.astype(jnp.float32).reshape(N, H * W, C), axis=1)   # global avgpool (glue)
    # fc8 (1x1 conv 4096->20, no bias): M=2, N=20 is far too small to pay Pallas/MXU tile
    # overhead (per perf review) -> plain JAX dot.
    logits = jnp.dot(z, P['fc8'], preferred_element_type=jnp.float32)
    # PyTorch fc8(avgpool(x)) output layout: [N, num_classes, 1, 1]
    return logits[:, :, None, None]


# ----------------------------------- main -----------------------------------

if __name__ == "__main__":
    key = jax.random.PRNGKey(0)
    k_param, k_x = jax.random.split(key)
    params = init_model(k_param)
    x = jax.random.normal(k_x, (2, 3, 16, 16), jnp.float32)   # NCHW, like PyTorch
    out = forward(params, x)
    out = jax.block_until_ready(out)
    assert out.shape == (2, NUM_CLASSES, 1, 1), out.shape
    assert bool(jnp.all(jnp.isfinite(out)))
    print("KERNEL_OK")
</pallas_src>

<mosaic_0001>
module attributes {stable_mosaic.version = 11 : i64} {
  func.func @_mm_kernel(%arg0: i32, %arg1: i32, %arg2: i32, %arg3: memref<256x128xbf16, #tpu.memory_space<vmem>>, %arg4: memref<128x128xbf16, #tpu.memory_space<vmem>>, %arg5: memref<256x128xbf16, #tpu.memory_space<vmem>>, %arg6: memref<256x128xf32, #tpu.memory_space<vmem>>) attributes {dimension_semantics = [#tpu.dimension_semantics<parallel>, #tpu.dimension_semantics<parallel>, #tpu.dimension_semantics<arbitrary>], iteration_bounds = array<i64: 2, 1, 1>, scalar_prefetch = 0 : i64, scratch_operands = 1 : i64, tpu.core_type = #tpu.core_type<tc>, window_params = [{transform_indices = @transform_0, window_bounds = array<i64: 256, 128>}, {transform_indices = @transform_1, window_bounds = array<i64: 128, 128>}, {transform_indices = @transform_2, window_bounds = array<i64: 256, 128>}]} {
    %c0_i32 = arith.constant 0 : i32
    %0 = arith.cmpi eq, %arg2, %c0_i32 : i32
    %1 = arith.extui %0 : i1 to i32
    %c0_i32_0 = arith.constant 0 : i32
    %2 = arith.cmpi ne, %1, %c0_i32_0 : i32
    scf.if %2 {
      %cst_10 = arith.constant 0.000000e+00 : f32
      %12 = vector.broadcast %cst_10 : f32 to vector<256x128xf32>
      %c0_11 = arith.constant 0 : index
      %c0_12 = arith.constant 0 : index
      %13 = vector.load %arg6[%c0_11, %c0_12] : memref<256x128xf32, #tpu.memory_space<vmem>>, vector<256x128xf32>
      tpu.vector_store %arg6[%c0_11, %c0_12], %12 {strides = array<i32>} : memref<256x128xf32, #tpu.memory_space<vmem>>, vector<256x128xf32>,
    } else {
    }
    %c0 = arith.constant 0 : index
    %c0_1 = arith.constant 0 : index
    %3 = vector.load %arg6[%c0, %c0_1] : memref<256x128xf32, #tpu.memory_space<vmem>>, vector<256x128xf32>
    %c0_2 = arith.constant 0 : index
    %c0_3 = arith.constant 0 : index
    %4 = vector.load %arg3[%c0_2, %c0_3] : memref<256x128xbf16, #tpu.memory_space<vmem>>, vector<256x128xbf16>
    %c0_4 = arith.constant 0 : index
    %c0_5 = arith.constant 0 : index
    %5 = vector.load %arg4[%c0_4, %c0_5] : memref<128x128xbf16, #tpu.memory_space<vmem>>, vector<128x128xbf16>
    %cst = arith.constant dense<0.000000e+00> : vector<256x128xf32>
    %6 = tpu.matmul %4, %5, %cst {dimension_numbers = #tpu.dot_dimension_numbers<[1], [0], [0], [1], [0, 0, 1, 1], [], []>} : vector<256x128xbf16>, vector<128x128xbf16>, vector<256x128xf32> -> vector<256x128xf32>
    %7 = arith.addf %3, %6 : vector<256x128xf32>
    %c0_6 = arith.constant 0 : index
    %c0_7 = arith.constant 0 : index
    %8 = vector.load %arg6[%c0_6, %c0_7] : memref<256x128xf32, #tpu.memory_space<vmem>>, vector<256x128xf32>
    tpu.vector_store %arg6[%c0_6, %c0_7], %7 {strides = array<i32>} : memref<256x128xf32, #tpu.memory_space<vmem>>, vector<256x128xf32>,
    %c0_i32_8 = arith.constant 0 : i32
    %9 = arith.cmpi eq, %arg2, %c0_i32_8 : i32
    %10 = arith.extui %9 : i1 to i32
    %c0_i32_9 = arith.constant 0 : i32
    %11 = arith.cmpi ne, %10, %c0_i32_9 : i32
    scf.if %11 {
      %c0_10 = arith.constant 0 : index
      %c0_11 = arith.constant 0 : index
      %12 = vector.load %arg6[%c0_10, %c0_11] : memref<256x128xf32, #tpu.memory_space<vmem>>, vector<256x128xf32>
      %13 = arith.truncf %12 : vector<256x128xf32> to vector<256x128xbf16>
      %c0_12 = arith.constant 0 : index
      %c0_13 = arith.constant 0 : index
      %14 = vector.load %arg5[%c0_12, %c0_13] : memref<256x128xbf16, #tpu.memory_space<vmem>>, vector<256x128xbf16>
      tpu.vector_store %arg5[%c0_12, %c0_13], %13 {strides = array<i32>} : memref<256x128xbf16, #tpu.memory_space<vmem>>, vector<256x128xbf16>,
    } else {
    }
    return
  }
  func.func @transform_0(%arg0: i32, %arg1: i32, %arg2: i32) -> (i32, i32) {
    %c0_i32 = arith.constant 0 : i32
    return %arg0, %arg2 : i32, i32
  }
  func.func @transform_1(%arg0: i32, %arg1: i32, %arg2: i32) -> (i32, i32) {
    %c0_i32 = arith.constant 0 : i32
    return %arg2, %arg1 : i32, i32
  }
  func.func @transform_2(%arg0: i32, %arg1: i32, %arg2: i32) -> (i32, i32) {
    %c0_i32 = arith.constant 0 : i32
    return %arg0, %arg1 : i32, i32
  }
}

</mosaic_0001>

<bundles_post_ra>
// kernel: tpu_custom_call.1
= control target key start
LH: loop header
LB: loop body
LE: loop exit
PB: predicated region body
PF: predicated region fallthrough
CT: control target
= control target key end

     0   :  { %7 = vsyncpa [#allocation4], 0  ;;  %s1838_s0 = inlined_call_operand.hbm [shape: bf16[512,128], index: 0, kind: input, shape index: {}]   ;;  %s1839_s1 = inlined_call_operand.hbm [shape: bf16[128,128], index: 1, kind: input, shape index: {}]   ;;  %s1840_s2 = inlined_call_operand.hbm [shape: bf16[512,128], index: 2, kind: output, shape index: {}]  }
   0x1   :  { %9 = vsyncpa [#allocation4 + $0x1], 0 }
   0x2   :  { %10 = vsyncpa [#allocation7], 0 }
   0x3   :  { %11 = vsyncpa [#allocation5], 0 }
   0x4   :  { %13 = vsyncpa [#allocation5 + $0x1], 0  ;;  %s1572_s9 = smov 0   ;;  %s1574_s10 = smov 0  }
   0x5   :  { %s1576_s11 = smov 0   ;;  %s1578_s12 = smov 0  }
   0x6   :  { %s1580_s13 = smov 0   ;;  %s1582_s14 = smov 0  }
   0x7 LB: > { %s1013_s15 = sadd.s32 4294967295, %s1548_s14   ;;  %s1014_s16 = sadd.s32 4294967294, %s1548_s14   ;;  %s1548_s14 = sphi %s1582_s14, %s19_s14   ;;  %s1544_s13 = sphi %s1580_s13, %s1864_s13   ;;  %s1540_s12 = sphi %s1578_s12, %s1863_s12   ;;  %s1536_s11 = sphi %s1576_s11, %s1862_s11   ;;  %s1532_s10 = sphi %s1574_s10, %s1861_s10   ;;  %s1528_s9 = sphi %s1572_s9, %s1860_s9  }
   0x8   : > { %p60_p0 = scmp.ne.s32.totalorder %s1532_s10, %s1528_s9  ;;  %p1606_p1 = scmp.eq.s32.totalorder %s1013_s15, 0 }
   0x9   : > { %p1610_p2 = scmp.eq.s32.totalorder %s1013_s15, 1  ;;  %p120_p3 = scmp.eq.s32.totalorder %s1014_s16, 1 }
   0xa   : > { %s1845_s17 = scalar_select %p1606_p1, 1, 0 }
   0xb   : > { %s1846_s18 = scalar_select %p1610_p2, 1, 0 }
   0xc   : > { %p1616_p4 = por %p1606_p1, %p60_p0  ;;  %p1015_p5 = scmp.ge.s32.totalorder %s1548_s14, 1 }
   0xd   : > { %p1621_p6 = por %p120_p3, %p60_p0  ;;  %p127_p7 = scmp.lt.s32.totalorder %s1548_s14, 3 }
   0xe   : > { %s1847_s19 = scalar_select %p1616_p4, 1, 0 }
   0xf   : > { %s1848_s20 = scalar_select %p1621_p6, 1, 0 }
  0x10   : > { %p1626_p8 = pnand %p1015_p5, %p127_p7  ;;  %s1550_s22 = smov [#allocation6]  }
  0x11   : > { %s143_s23 = sshll.u32 %s1550_s22, 4  ;;  %s38_s25 = sadd.s32 1, %s1544_s13  ;;  %s144_s23 = int_to_ptr.vmem [resolvable:$true] %s143_s23 }
  0x12   : > { %s1849_s21 = scalar_select %p1626_p8, 1, 0 }
  0x13   : > { %p1311_p9 = pneg %p1626_p8  ;;  %s1404_s28 = scalar_lea.hbm %s1839_s1, 1024 }
  0x14   : > { %p1405_p12 = scmp.ne.s32.totalorder %s1839_s1, %s1404_s28  ;;  %p1411_p5 = scmp.lt.u32.totalorder %s1404_s28, %s1839_s1 }
  0x15   : > { %p1635_p11 = pnand %p1311_p9, %p1606_p1 }
  0x17   : > { %p1406_p13 = pneg %p1635_p11 }
  0x19   : > { %p1407_p0 = pnand %p1406_p13, %p1405_p12 }
  0x1b   : > { %p1408_p3 = pneg %p1407_p0 }
  0x1d   : > { %p1413_p7 = pnand %p1411_p5, %p1408_p3 }
  0x1f   : > { %1416 = shalt.err (!%p1413_p7)
}
  0x20   : > { %s1417_s5 = scalar_lea.vmem %s144_s23, 1024  ;;  %p1425_p1 = scmp.lt.s32.totalorder %s144_s23, %s144_s23 }
  0x21   : > { %p1418_p9 = scmp.ne.s32.totalorder %s144_s23, %s1417_s5  ;;  %p1426_p4 = scmp.lt.s32.totalorder %s1417_s5, %s1417_s5 }
  0x23   : > { %p1420_p10 = pnand %p1418_p9, %p1406_p13  ;;  %p1427_p8 = por %p1426_p4, %p1425_p1 }
  0x25   : > { %p1421_p6 = pneg %p1420_p10 }
  0x27   : > { %p1428_p2 = pnand %p1427_p8, %p1421_p6 }
  0x29   : > { %1431 = shalt.err (!%p1428_p2)
}
  0x2a   : > { %s1551_s6 = smov 64   ;;  %s1552_s7 = smov 4  }
  0x2b   : > { %1314 = dma.hbm_to_vmem [thread:$0]  (!%p1635_p11), %s1839_s1, 1024, %s144_s23, [#allocation7], %s1551_s6, %s1551_s6, %s1552_s7  }
  0x2c   : > { %p40_p1 = scmp.ge.s32.totalorder %s38_s25, 2  ;;  %s47_s16 = sadd.s32 1, %s1536_s11 }
  0x2d   : > { %p54_p2 = scmp.ne.s32.totalorder %s1536_s11, %s1532_s10  ;;  %p55_p4 = scmp.eq.s32.totalorder %s1548_s14, 0 }
  0x2e   : > { %s1866_s25 = smov (%p40_p1, %s38_s25), 0  ;;  %p1852_p8 = scmp.ne.s32.totalorder %s1846_s18, 0 }
  0x2f   : > { %p1665_p6 = por %p55_p4, %p54_p2  ;;  %s42_s26 = ssub.s32 %s1544_s13, %s1866_s25 }
  0x30   : > { %p1671_p10 = por %p1852_p8, %p54_p2  ;;  %p1324_p12 = scmp.lt.s32.totalorder %s1548_s14, 2 }
  0x31   : > { %p45_p11 = scmp.eq.s32.totalorder %s42_s26, 0  ;;  %s157_s23 = sand.u32 1, %s1536_s11  }
  0x32   : > { %s1018_s27 = sshll.u32 %s157_s23, 7  ;;  %s1086_s29 = sshll.u32 %s1544_s13, 11 }
  0x33   : > { %s1680_s28 = scalar_select %p45_p11, %s1536_s11, %s47_s16  }
  0x34   : > { %s1686_s4 = scalar_lea.hbm %s1838_s0, %s1086_s29  ;;  %s161_s18 = scalar_lea.vmem [#allocation3], %s1018_s27 }
  0x35   : > { %s169_s5 = sshll.u32 %s161_s18, 4  ;;  %p1692_p13 = pnand %p1324_p12, %p1665_p6  ;;  %s1688_s5 = int_to_ptr.vmem [resolvable:$true] %s169_s5 }
  0x36   : > { %s1696_s15 = scalar_lea.sflag [#allocation4], %s157_s23  ;;  %s1432_s16 = scalar_lea.hbm %s1686_s4, 2048 }
  0x37   : > { %p1433_p0 = scmp.ne.s32.totalorder %s1686_s4, %s1432_s16  ;;  %p1434_p3 = pneg %p1692_p13 }
  0x38   : > { %s1437_s22 = scalar_lea.hbm %s1838_s0, 4096  ;;  %p1438_p9 = scmp.lt.u32.totalorder %s1686_s4, %s1838_s0 }
  0x39   : > { %p1435_p5 = pnand %p1434_p3, %p1433_p0  ;;  %p1439_p1 = scmp.lt.u32.totalorder %s1437_s22, %s1432_s16 }
  0x3a   : > { %p1441_p4 = scmp.lt.u32.totalorder %s1432_s16, %s1686_s4 }
  0x3b   : > { %p1436_p7 = pneg %p1435_p5  ;;  %p1440_p2 = por %p1439_p1, %p1438_p9 }
  0x3d   : > { %p1442_p6 = por %p1441_p4, %p1440_p2 }
  0x3f   : > { %p1443_p8 = pnand %p1442_p6, %p1436_p7 }
  0x41   : > { %1446 = shalt.err (!%p1443_p8)
}
  0x42   : > { %s1447_s23 = scalar_lea.vmem %s1688_s5, 2048  ;;  %s1553_s3 = smov [#allocation3]  }
  0x43   : > { %p1448_p12 = scmp.ne.s32.totalorder %s1688_s5, %s1447_s23  ;;  %s1452_s18 = sshll.u32 %s1553_s3, 4  ;;  %s1453_s18 = int_to_ptr.vmem [resolvable:$false] %s1452_s18 }
  0x44   : > { %s1454_s26 = scalar_lea.vmem %s1453_s18, 4096  ;;  %p1455_p5 = scmp.lt.s32.totalorder %s1688_s5, %s1453_s18 }
  0x45   : > { %p1450_p11 = pnand %p1448_p12, %p1434_p3  ;;  %p1456_p9 = scmp.lt.s32.totalorder %s1454_s26, %s1447_s23 }
  0x47   : > { %p1451_p0 = pneg %p1450_p11  ;;  %p1457_p1 = por %p1456_p9, %p1455_p5 }
  0x49   : > { %p1458_p2 = pnand %p1457_p1, %p1451_p0 }
  0x4b   : > { %1461 = shalt.err (!%p1458_p2)
}
  0x4c   : > { %1318 = dma.hbm_to_vmem [thread:$0]  (!%p1692_p13), %s1686_s4, 2048, %s1688_s5, %s1696_s15, %s1551_s6, %s1551_s6, %s1552_s7  }
  0x4d   : > { %p1855_p3 = scmp.ne.s32.totalorder %s1849_s21, 0 }
  0x4e   : > { %s1730_s16 = sand.u32 (!%p1855_p3), 1, %s1532_s10   ;;  %p1856_p7 = scmp.ne.s32.totalorder (!%p1855_p3), %s1847_s19, 0 }
  0x4f   : > { %181 = sbr.rel (%p1855_p3) target bundleno = 379 (0x17b), region = 28  ;;  %s1022_s27 = sshll.u32 (!%p1855_p3), %s1730_s16, 7 }
  0x50   : > { %s184_s22 = scalar_lea.sflag (!%p1855_p3), [#allocation4], %s1730_s16  ;;  %s1736_s8 = scalar_lea.vmem (!%p1855_p3), [#allocation3], %s1022_s27 }
  0x56   : > { %1515 = dma.done.wait (%p1856_p7), %s184_s22, 2048  }
  0x57   : > { %1517 = vsyncadd (%p1856_p7), %s184_s22, 4294965248  ;;  %p1857_p13 = scmp.ne.s32.totalorder %s1845_s17, 0 }
  0x59   : > { %1519 = dma.done.wait (%p1857_p13), [#allocation7], 1024  }
  0x5a   : > { %1521 = vsyncadd (%p1857_p13), [#allocation7], 4294966272  ;;  %v1380_v0 = vld [vmem:[#allocation6] sm:$0xff]   ;;  %v1381_v1 = vld [vmem:[#allocation6 + $0x8] sm:$0xff]   ;;  %s1764_s17 = scalar_lea.vmem [#allocation8], %s1022_s27  ;;  %s1119_s19 = sshll.u32 %s1540_s12, 11 }
  0x5b   : > { %1239 = vmatprep.subr.bf16.mxu0 %v1380_v0  ;;  %1287 = vmatprep.subr.bf16.mxu1 %v1380_v0  ;;  %v1382_v2 = vld [vmem:[#allocation6 + $0x10] sm:$0xff]   ;;  %v1383_v3 = vld [vmem:[#allocation6 + $0x18] sm:$0xff]   ;;  %v1388_v4 = vld [vmem:[%s1736_s8] sm:$0xff]   ;;  %s911_s21 = sshll.u32 %s1764_s17, 4  ;;  %s1783_s4 = scalar_lea.hbm %s1840_s2, %s1119_s19  ;;  %s1785_s21 = int_to_ptr.vmem [resolvable:$true] %s911_s21 }
  0x5c   : > { %1240 = vmatpush3.bf16.msra.mxu0 %v1380_v0  ;;  %1295 = vmatpush3.bf16.msra.mxu1 %v1380_v0  ;;  %v1389_v5 = vld [vmem:[%s1736_s8 + $0x40] sm:$0xff]   ;;  %v1385_v7 = vld [vmem:[#allocation6 + $0x28] sm:$0xff]   ;;  %v1386_v8 = vld [vmem:[#allocation6 + $0x30] sm:$0xff]   ;;  %s897_s12 = scalar_lea.sflag [#allocation5], %s1730_s16  ;;  %s1462_s5 = scalar_lea.vmem %s1785_s21, 2048 }
  0x5d   : > { %1241 = vmatprep.subr.bf16.mxu0 %v1381_v1  ;;  %1288 = vmatprep.subr.bf16.mxu1 %v1381_v1  ;;  %v1384_v6 = vld [vmem:[#allocation6 + $0x20] sm:$0xff]   ;;  %v1387_v9 = vld [vmem:[#allocation6 + $0x38] sm:$0xff]   ;;  %v1390_v10 = vld [vmem:[%s1736_s8 + $0x8] sm:$0xff]   ;;  %p1463_p4 = scmp.ne.s32.totalorder %s1785_s21, %s1462_s5  ;;  %s1554_s15 = smov [#allocation8]  }
  0x5e   : > { %1255 = vmatprep.mubr.bf16.mxu0 %v1388_v4  ;;  %1271 = vmatprep.mubr.bf16.mxu1 %v1389_v5  ;;  %v1391_v11 = vld [vmem:[%s1736_s8 + $0x48] sm:$0xff]   ;;  %v1392_v12 = vld [vmem:[%s1736_s8 + $0x10] sm:$0xff]   ;;  %v1394_v14 = vld [vmem:[%s1736_s8 + $0x18] sm:$0xff]   ;;  %s1466_s29 = sshll.u32 %s1554_s15, 4  ;;  %s1467_s29 = int_to_ptr.vmem [resolvable:$false] %s1466_s29 }
  0x5f   : > { %v1393_v13 = vld [vmem:[%s1736_s8 + $0x50] sm:$0xff]   ;;  %v1395_v15 = vld [vmem:[%s1736_s8 + $0x58] sm:$0xff]   ;;  %v1396_v16 = vld [vmem:[%s1736_s8 + $0x20] sm:$0xff]   ;;  %p1464_p6 = pnand %p1463_p4, %p1671_p10  ;;  %s1468_s30 = scalar_lea.vmem %s1467_s29, 4096 }
  0x60   : > { %1242 = vmatpush3.bf16.msra.mxu0 %v1381_v1  ;;  %1296 = vmatpush3.bf16.msra.mxu1 %v1381_v1  ;;  %v1397_v17 = vld [vmem:[%s1736_s8 + $0x60] sm:$0xff]   ;;  %v1398_v18 = vld [vmem:[%s1736_s8 + $0x28] sm:$0xff]   ;;  %v1400_v20 = vld [vmem:[%s1736_s8 + $0x30] sm:$0xff]   ;;  %p1469_p12 = scmp.lt.s32.totalorder %s1785_s21, %s1467_s29  ;;  %p1470_p11 = scmp.lt.s32.totalorder %s1468_s30, %s1462_s5 }
  0x61   : > { %1243 = vmatprep.subr.bf16.mxu0 %v1382_v2  ;;  %1289 = vmatprep.subr.bf16.mxu1 %v1382_v2  ;;  %v1399_v19 = vld [vmem:[%s1736_s8 + $0x68] sm:$0xff]   ;;  %v1401_v21 = vld [vmem:[%s1736_s8 + $0x70] sm:$0xff]   ;;  %v1402_v22 = vld [vmem:[%s1736_s8 + $0x38] sm:$0xff]   ;;  %p1465_p8 = pneg %p1464_p6 }
  0x62   : > { %v1403_v23 = vld [vmem:[%s1736_s8 + $0x78] sm:$0xff]   ;;  %p1471_p0 = por %p1470_p11, %p1469_p12 }
  0x64   : > { %1244 = vmatpush3.bf16.msra.mxu0 %v1382_v2  ;;  %1297 = vmatpush3.bf16.msra.mxu1 %v1382_v2  ;;  %p1472_p5 = pnand %p1471_p0, %p1465_p8 }
  0x65   : > { %1245 = vmatprep.subr.bf16.mxu0 %v1383_v3  ;;  %1290 = vmatprep.subr.bf16.mxu1 %v1383_v3 }
  0x68   : > { %1246 = vmatpush3.bf16.msra.mxu0 %v1383_v3  ;;  %1298 = vmatpush3.bf16.msra.mxu1 %v1383_v3 }
  0x69   : > { %1247 = vmatprep.subr.bf16.mxu0 %v1384_v6  ;;  %1291 = vmatprep.subr.bf16.mxu1 %v1384_v6 }
  0x6c   : > { %1248 = vmatpush3.bf16.msra.mxu0 %v1384_v6  ;;  %1299 = vmatpush3.bf16.msra.mxu1 %v1384_v6 }
  0x6d   : > { %1249 = vmatprep.subr.bf16.mxu0 %v1385_v7  ;;  %1292 = vmatprep.subr.bf16.mxu1 %v1385_v7 }
  0x70   : > { %1250 = vmatpush3.bf16.msra.mxu0 %v1385_v7  ;;  %1300 = vmatpush3.bf16.msra.mxu1 %v1385_v7 }
  0x71   : > { %1251 = vmatprep.subr.bf16.mxu0 %v1386_v8  ;;  %1293 = vmatprep.subr.bf16.mxu1 %v1386_v8 }
  0x74   : > { %1252 = vmatpush3.bf16.msra.mxu0 %v1386_v8  ;;  %1301 = vmatpush3.bf16.msra.mxu1 %v1386_v8 }
  0x75   : > { %1253 = vmatprep.subr.bf16.mxu0 %v1387_v9  ;;  %1294 = vmatprep.subr.bf16.mxu1 %v1387_v9 }
  0x78   : > { %1254 = vmatpush3.bf16.msra.mxu0 %v1387_v9  ;;  %1302 = vmatpush3.bf16.msra.mxu1 %v1387_v9 }
  0x7b   : > { %1256 = vmatmul.mubr.bf16.vlgmr.msra.gmra.mrb[0].mxu0 %v1390_v10  ;;  %1272 = vmatmul.mubr.bf16.vlgmr.msra.gmra.mrb[0].mxu1 %v1391_v11 }
  0x7c   : > { %1259 = vmatprep.mubr.bf16.mxu0 %v1392_v12  ;;  %1275 = vmatprep.mubr.bf16.mxu1 %v1393_v13 }
  0x83   : > { %1260 = vmatmul.mubr.bf16.gmra.mrb[4].mxu0 %v1394_v14  ;;  %1276 = vmatmul.mubr.bf16.gmra.mrb[4].mxu1 %v1395_v15 }
  0x84   : > { %1263 = vmatprep.mubr.bf16.mxu0 %v1396_v16  ;;  %1279 = vmatprep.mubr.bf16.mxu1 %v1397_v17 }
  0x8b   : > { %1264 = vmatmul.mubr.bf16.gmra.mrb[8].mxu0 %v1398_v18  ;;  %1280 = vmatmul.mubr.bf16.gmra.mrb[8].mxu1 %v1399_v19 }
  0x8c   : > { %1267 = vmatprep.mubr.bf16.mxu0 %v1400_v20  ;;  %1283 = vmatprep.mubr.bf16.mxu1 %v1401_v21 }
  0x93   : > { %1268 = vmatmul.mubr.bf16.gmra.mrb[12].mxu0 %v1402_v22  ;;  %1284 = vmatmul.mubr.bf16.gmra.mrb[12].mxu1 %v1403_v23 }
 0x14e   : > { %v1257_v24 = vpop.f32.mrb[0].mxu0  ;;  %v1273_v25 = vpop.f32.mrb[0].mxu1 }
 0x14f   : > { %v510_v26 = vpop.f32.mrb[1].mxu0  ;;  %v574_v27 = vpop.f32.mrb[1].mxu1 }
 0x150   : > { %v1258_v28 = vpop.f32.mrb[2].mxu0  ;;  %v1274_v29 = vpop.f32.mrb[2].mxu1 }
 0x151   : > { %v1128_v30 = vpack.c.bf16 %v1258_v28, %v1257_v24  ;;  %v1168_v31 = vpack.c.bf16 %v1274_v29, %v1273_v25  ;;  %v513_v32 = vpop.f32.mrb[3].mxu0  ;;  %v577_v33 = vpop.f32.mrb[3].mxu1 }
 0x152   : > { %v1123_v34 = vpack.c.bf16 %v513_v32, %v510_v26  ;;  %v1163_v35 = vpack.c.bf16 %v577_v33, %v574_v27 }
 0x153   : > { %1200 = vst [vmem:[%s1764_s17 + $0x8] sm:$0xff] %v1128_v30   ;;  %1208 = vst [vmem:[%s1764_s17 + $0x48] sm:$0xff] %v1168_v31  }
 0x154   : > { %1124 = vst [vmem:[%s1764_s17] sm:$0xff] %v1123_v34   ;;  %1207 = vst [vmem:[%s1764_s17 + $0x40] sm:$0xff] %v1163_v35  }
 0x156   : > { %v1261_v36 = vpop.f32.mrb[4].mxu0  ;;  %v1277_v37 = vpop.f32.mrb[4].mxu1 }
 0x157   : > { %v526_v38 = vpop.f32.mrb[5].mxu0  ;;  %v590_v39 = vpop.f32.mrb[5].mxu1 }
 0x158   : > { %v1262_v40 = vpop.f32.mrb[6].mxu0  ;;  %v1278_v41 = vpop.f32.mrb[6].mxu1 }
 0x159   : > { %v1138_v42 = vpack.c.bf16 %v1262_v40, %v1261_v36  ;;  %v1178_v43 = vpack.c.bf16 %v1278_v41, %v1277_v37  ;;  %v529_v44 = vpop.f32.mrb[7].mxu0  ;;  %v593_v45 = vpop.f32.mrb[7].mxu1 }
 0x15a   : > { %v1133_v46 = vpack.c.bf16 %v529_v44, %v526_v38  ;;  %v1173_v47 = vpack.c.bf16 %v593_v45, %v590_v39 }
 0x15b   : > { %1202 = vst [vmem:[%s1764_s17 + $0x18] sm:$0xff] %v1138_v42   ;;  %1210 = vst [vmem:[%s1764_s17 + $0x58] sm:$0xff] %v1178_v43  }
 0x15c   : > { %1201 = vst [vmem:[%s1764_s17 + $0x10] sm:$0xff] %v1133_v46   ;;  %1209 = vst [vmem:[%s1764_s17 + $0x50] sm:$0xff] %v1173_v47  }
 0x15e   : > { %v1265_v48 = vpop.f32.mrb[8].mxu0  ;;  %v1281_v49 = vpop.f32.mrb[8].mxu1 }
 0x15f   : > { %v542_v50 = vpop.f32.mrb[9].mxu0  ;;  %v606_v51 = vpop.f32.mrb[9].mxu1 }
 0x160   : > { %v1266_v52 = vpop.f32.mrb[10].mxu0  ;;  %v1282_v53 = vpop.f32.mrb[10].mxu1 }
 0x161   : > { %v1148_v54 = vpack.c.bf16 %v1266_v52, %v1265_v48  ;;  %v1188_v55 = vpack.c.bf16 %v1282_v53, %v1281_v49  ;;  %v545_v56 = vpop.f32.mrb[11].mxu0  ;;  %v609_v57 = vpop.f32.mrb[11].mxu1 }
 0x162   : > { %v1143_v58 = vpack.c.bf16 %v545_v56, %v542_v50  ;;  %v1183_v59 = vpack.c.bf16 %v609_v57, %v606_v51 }
 0x163   : > { %1204 = vst [vmem:[%s1764_s17 + $0x28] sm:$0xff] %v1148_v54   ;;  %1212 = vst [vmem:[%s1764_s17 + $0x68] sm:$0xff] %v1188_v55  }
 0x164   : > { %1203 = vst [vmem:[%s1764_s17 + $0x20] sm:$0xff] %v1143_v58   ;;  %1211 = vst [vmem:[%s1764_s17 + $0x60] sm:$0xff] %v1183_v59  }
 0x166   : > { %v1269_v60 = vpop.f32.mrb[12].mxu0  ;;  %v1285_v61 = vpop.f32.mrb[12].mxu1 }
 0x167   : > { %v558_v62 = vpop.f32.mrb[13].mxu0  ;;  %v622_v63 = vpop.f32.mrb[13].mxu1 }
 0x168   : > { %v1270_v0 = vpop.f32.mrb[14].mxu0  ;;  %v1286_v1 = vpop.f32.mrb[14].mxu1 }
 0x169   : > { %v1158_v2 = vpack.c.bf16 %v1270_v0, %v1269_v60  ;;  %v1198_v3 = vpack.c.bf16 %v1286_v1, %v1285_v61  ;;  %v561_v4 = vpop.f32.mrb[15].mxu0  ;;  %v625_v5 = vpop.f32.mrb[15].mxu1 }
 0x16a   : > { %v1153_v6 = vpack.c.bf16 %v561_v4, %v558_v62  ;;  %v1193_v7 = vpack.c.bf16 %v625_v5, %v622_v63 }
 0x16b   : > { %1206 = vst [vmem:[%s1764_s17 + $0x38] sm:$0xff] %v1158_v2   ;;  %1214 = vst [vmem:[%s1764_s17 + $0x78] sm:$0xff] %v1198_v3  }
 0x16c   : > { %1205 = vst [vmem:[%s1764_s17 + $0x30] sm:$0xff] %v1153_v6   ;;  %1213 = vst [vmem:[%s1764_s17 + $0x70] sm:$0xff] %v1193_v7  }
 0x16d   : > { %1475 = shalt.err (!%p1472_p5)
}
 0x16e   : > { %s1476_s23 = scalar_lea.hbm %s1783_s4, 2048  ;;  %s1480_s26 = scalar_lea.hbm %s1840_s2, 4096 }
 0x16f   : > { %p1477_p9 = scmp.ne.s32.totalorder %s1783_s4, %s1476_s23  ;;  %p1481_p3 = scmp.lt.u32.totalorder %s1783_s4, %s1840_s2 }
 0x170   : > { %p1482_p7 = scmp.lt.u32.totalorder %s1480_s26, %s1476_s23  ;;  %p1484_p4 = scmp.lt.u32.totalorder %s1476_s23, %s1783_s4 }
 0x171   : > { %p1478_p1 = pnand %p1477_p9, %p1671_p10 }
 0x172   : > { %p1483_p13 = por %p1482_p7, %p1481_p3 }
 0x173   : > { %p1479_p2 = pneg %p1478_p1 }
 0x174   : > { %p1485_p6 = por %p1484_p4, %p1483_p13 }
 0x176   : > { %p1486_p8 = pnand %p1485_p6, %p1479_p2 }
 0x178   : > { %1489 = shalt.err (!%p1486_p8)
}
 0x179   : > { %s1555_s8 = smov 64   ;;  %s1556_s17 = smov 4  }
 0x17a   : > { %1309 = dma.vmem_to_hbm [thread:$0]  (%p1671_p10), %s1785_s21, 2048, %s1783_s4, %s897_s12, %s1555_s8, %s1555_s8, %s1556_s17  }
 0x17b PF: > { %s926_s19 = sand.u32 1, %s1528_s9   ;;  %p1858_p12 = scmp.ne.s32.totalorder %s1848_s20, 0 }
 0x17c   : > { %p1859_p11 = scmp.ge.s32.totalorder %s1548_s14, 2  ;;  %s927_s6 = scalar_lea.sflag [#allocation5], %s926_s19 }
 0x17e   : > { %p1320_p0 = pnand %p1859_p11, %p1858_p12 }
 0x180   : > { %1523 = dma.done.wait (!%p1320_p0), %s927_s6, 2048  }
 0x181   : > { %1525 = vsyncadd (!%p1320_p0), %s927_s6, 4294965248  ;;  %s19_s14 = sadd.s32 1, %s1548_s14   ;;  %s1860_s9 = smov %s1532_s10 }
 0x182   : > { %p16_p5 = scmp.ge.s32.totalorder %s19_s14, 4   ;;  %s1861_s10 = smov %s1536_s11 }
 0x183   : > { %s1862_s11 = smov %s1680_s28  ;;  %s1863_s12 = smov %s1544_s13 }
 0x184   : > { %s1864_s13 = smov %s1866_s25  ;;  %18 = sbr.rel (!%p16_p5) target bundleno = 7 (0x7), region = 86 }
 0x18b   :  { %932 = vsyncpa [#allocation4], 1 }
 0x18c   :  { %934 = vsyncpa [#allocation4 + $0x1], 1 }
 0x18d   :  { %935 = vsyncpa [#allocation7], 1 }
 0x18e   :  { %936 = vsyncpa [#allocation5], 1 }
 0x18f   :  { %938 = vsyncpa [#allocation5 + $0x1], 1 }

</bundles_post_ra>
